<compile_context>
chip_gen: v6e
topology: v6e:2x2x1
jax: 0.10.0
libtpu: 0.0.40
codegen_flags: <defaults>
</compile_context>

<pallas_src>
import functools

import jax
import jax.numpy as jnp
from jax.experimental import pallas as pl
from jax.experimental.pallas import tpu as pltpu


def _pfn_kernel(x_ref, w_ref, shift_ref, o_ref):
    # x_ref:     (tn, M, C)   tile of voxels (points-in-voxel layout, channels last)
    # w_ref:     (C, U)       linear weight, transposed, with BN scale folded in
    # shift_ref: (1, U)       BN shift = beta - mean * scale
    # o_ref:     (tn, M, 2U)  [relu(bn(linear(x))) | per-voxel max repeated over M]
    tn, m, c = x_ref.shape
    u = w_ref.shape[1]

    # Single 2D MXU matmul over all points of all voxels in the tile.
    # M is a multiple of 8 (sublanes), so this reshape is a layout no-op.
    x2d = x_ref[...].reshape(tn * m, c)
    lin = jnp.dot(x2d, w_ref[...], preferred_element_type=jnp.float32)

    # Folded eval-mode BatchNorm (scale already in the weight) + ReLU.
    y2d = jnp.maximum(lin + shift_ref[...], 0.0)
    y = y2d.reshape(tn, m, u)

    # Max-pool over the points-in-voxel axis (dim=1), keepdim.
    y_max = jnp.max(y, axis=1, keepdims=True)

    # Write the two halves of the output directly (no concatenate materialization).
    o_ref[:, :, :u] = y.astype(o_ref.dtype)
    o_ref[:, :, u:] = jnp.broadcast_to(y_max, (tn, m, u)).astype(o_ref.dtype)


@functools.partial(jax.jit, static_argnames=("eps", "tile_n", "out_dtype"))
def pppfn_layer_forward(inputs, weight, gamma, beta, running_mean, running_var,
                        eps=1e-3, tile_n=128, out_dtype=jnp.float32):
    """PPPFNLayer forward (last_layer=False, mode='max', no aligned_distance).

    inputs: (N, M, C) float32   N voxels, M points/voxel, C point features
    weight: (U, C)    float32   nn.Linear weight (out_features x in_features)
    gamma/beta/running_mean/running_var: (U,) float32  (eval-mode BN statistics)
    returns: (N, M, 2*U) out_dtype
    """
    N, M, C = inputs.shape
    U = weight.shape[0]

    # Glue: fold eval-mode BN into the weight (scale) and a per-channel shift.
    scale = gamma / jnp.sqrt(running_var + eps)                       # (U,)
    shift = (beta - running_mean * scale).reshape(1, U).astype(jnp.float32)
    w_cu = (weight * scale[:, None]).T.astype(jnp.float32)            # (C, U)

    # Tile the voxel axis; handle N not divisible by the tile.
    tn = min(int(tile_n), N)
    n_blocks = pl.cdiv(N, tn)
    n_pad = n_blocks * tn

    x = inputs.astype(jnp.float32)
    if n_pad != N:
        # Cheap: input traffic is ~1/8 of output traffic. Padded voxels are independent
        # rows; their (garbage) outputs fall in the masked-out part of the last block.
        x = jnp.pad(x, ((0, n_pad - N), (0, 0), (0, 0)))

    out = pl.pallas_call(
        _pfn_kernel,
        out_shape=jax.ShapeDtypeStruct((N, M, 2 * U), out_dtype),
        grid_spec=pltpu.PrefetchScalarGridSpec(
            num_scalar_prefetch=0,
            grid=(n_blocks,),
            in_specs=[
                pl.BlockSpec((tn, M, C), lambda i: (i, 0, 0)),
                pl.BlockSpec((C, U), lambda i: (0, 0)),
                pl.BlockSpec((1, U), lambda i: (0, 0)),
            ],
            out_specs=pl.BlockSpec((tn, M, 2 * U), lambda i: (i, 0, 0)),
        ),
        compiler_params=pltpu.CompilerParams(
            dimension_semantics=("parallel",),
            vmem_limit_bytes=48 * 1024 * 1024,
        ),
    )(x, w_cu, shift)
    return out


def _reference(inputs, weight, gamma, beta, running_mean, running_var, eps=1e-3):
    # Pure-JAX reference mirroring the PyTorch forward (eval-mode BN).
    lin = jnp.einsum("nmc,uc->nmu", inputs, weight)
    x = (lin - running_mean) / jnp.sqrt(running_var + eps) * gamma + beta
    x = jnp.maximum(x, 0.0)
    x_max = jnp.max(x, axis=1, keepdims=True)
    x_rep = jnp.broadcast_to(x_max, x.shape)
    return jnp.concatenate([x, x_rep], axis=-1)


if __name__ == "__main__":
    # Small shapes consistent with PointPillars PFN:
    #   N voxels, M=32 points/voxel, in_channels C=8,
    #   out_channels=64 -> units U = 64 // 2 = 32 (last_layer=False).
    M, C = 32, 8
    OUT_CHANNELS = 64
    U = OUT_CHANNELS // 2

    key = jax.random.PRNGKey(0)
    k_in, k_w, k_g, k_b, k_m, k_v, k_in2 = jax.random.split(key, 7)

    weight = jax.random.normal(k_w, (U, C), dtype=jnp.float32) * 0.1
    gamma = 1.0 + 0.1 * jax.random.normal(k_g, (U,), dtype=jnp.float32)
    beta = 0.1 * jax.random.normal(k_b, (U,), dtype=jnp.float32)
    running_mean = 0.1 * jax.random.normal(k_m, (U,), dtype=jnp.float32)
    running_var = jnp.abs(1.0 + 0.1 * jax.random.normal(k_v, (U,), dtype=jnp.float32))

    # Case 1: N divisible by the (clamped) tile.
    N1 = 16
    inputs1 = jax.random.normal(k_in, (N1, M, C), dtype=jnp.float32)
    out1 = pppfn_layer_forward(inputs1, weight, gamma, beta, running_mean, running_var)
    out1 = jax.block_until_ready(out1)
    ref1 = _reference(inputs1, weight, gamma, beta, running_mean, running_var)
    assert out1.shape == (N1, M, 2 * U)
    assert jnp.allclose(out1, ref1, atol=1e-4, rtol=1e-4)

    # Case 2: N NOT divisible by tile_n (exercises input padding + masked edge output block).
    N2 = 100
    inputs2 = jax.random.normal(k_in2, (N2, M, C), dtype=jnp.float32)
    out2 = pppfn_layer_forward(inputs2, weight, gamma, beta, running_mean, running_var,
                               tile_n=32)
    out2 = jax.block_until_ready(out2)
    ref2 = _reference(inputs2, weight, gamma, beta, running_mean, running_var)
    assert out2.shape == (N2, M, 2 * U)
    assert jnp.allclose(out2, ref2, atol=1e-4, rtol=1e-4)

    print("KERNEL_OK")
</pallas_src>

<mosaic_0001>
module attributes {stable_mosaic.version = 11 : i64} {
  func.func @_pfn_kernel(%arg0: i32, %arg1: memref<16x32x8xf32, #tpu.memory_space<vmem>>, %arg2: memref<8x32xf32, #tpu.memory_space<vmem>>, %arg3: memref<1x32xf32, #tpu.memory_space<vmem>>, %arg4: memref<16x32x64xf32, #tpu.memory_space<vmem>>) attributes {dimension_semantics = [#tpu.dimension_semantics<parallel>], iteration_bounds = array<i64: 1>, scalar_prefetch = 0 : i64, scratch_operands = 0 : i64, tpu.core_type = #tpu.core_type<tc>, window_params = [{transform_indices = @transform_0, window_bounds = array<i64: 16, 32, 8>}, {pipeline_mode = #tpu.pipeline_mode<synchronous>, transform_indices = @transform_1, window_bounds = array<i64: 8, 32>}, {pipeline_mode = #tpu.pipeline_mode<synchronous>, transform_indices = @transform_2, window_bounds = array<i64: 1, 32>}, {transform_indices = @transform_3, window_bounds = array<i64: 16, 32, 64>}]} {
    %c0 = arith.constant 0 : index
    %c0_0 = arith.constant 0 : index
    %c0_1 = arith.constant 0 : index
    %0 = vector.load %arg1[%c0, %c0_0, %c0_1] : memref<16x32x8xf32, #tpu.memory_space<vmem>>, vector<16x32x8xf32>
    %1 = vector.shape_cast %0 : vector<16x32x8xf32> to vector<512x8xf32>
    %c0_2 = arith.constant 0 : index
    %c0_3 = arith.constant 0 : index
    %2 = vector.load %arg2[%c0_2, %c0_3] : memref<8x32xf32, #tpu.memory_space<vmem>>, vector<8x32xf32>
    %cst = arith.constant dense<0.000000e+00> : vector<512x32xf32>
    %3 = tpu.matmul %1, %2, %cst {dimension_numbers = #tpu.dot_dimension_numbers<[1], [0], [0], [1], [0, 0, 1, 1], [], []>} : vector<512x8xf32>, vector<8x32xf32>, vector<512x32xf32> -> vector<512x32xf32>
    %c0_4 = arith.constant 0 : index
    %c0_5 = arith.constant 0 : index
    %4 = vector.load %arg3[%c0_4, %c0_5] : memref<1x32xf32, #tpu.memory_space<vmem>>, vector<1x32xf32>
    %5 = vector.broadcast %4 : vector<1x32xf32> to vector<512x32xf32>
    %6 = arith.addf %3, %5 : vector<512x32xf32>
    %cst_6 = arith.constant 0.000000e+00 : f32
    %7 = vector.broadcast %cst_6 : f32 to vector<512x32xf32>
    %8 = arith.maximumf %6, %7 : vector<512x32xf32>
    %9 = vector.shape_cast %8 : vector<512x32xf32> to vector<16x32x32xf32>
    %cst_7 = arith.constant dense<0xFF800000> : vector<16x32xf32>
    %10 = vector.multi_reduction <maximumf>, %9, %cst_7 [1] : vector<16x32x32xf32> to vector<16x32xf32>
    %11 = vector.shape_cast %10 : vector<16x32xf32> to vector<16x1x32xf32>
    %c0_8 = arith.constant 0 : index
    %c0_9 = arith.constant 0 : index
    %c0_10 = arith.constant 0 : index
    %12 = vector.load %arg4[%c0_8, %c0_9, %c0_10] : memref<16x32x64xf32, #tpu.memory_space<vmem>>, vector<16x32x32xf32>
    tpu.vector_store %arg4[%c0_8, %c0_9, %c0_10], %9 {strides = array<i32>} : memref<16x32x64xf32, #tpu.memory_space<vmem>>, vector<16x32x32xf32>,
    %13 = vector.shape_cast %11 : vector<16x1x32xf32> to vector<16x1x32xf32>
    %14 = vector.broadcast %13 : vector<16x1x32xf32> to vector<16x32x32xf32>
    %c0_11 = arith.constant 0 : index
    %c0_12 = arith.constant 0 : index
    %c32 = arith.constant 32 : index
    %15 = vector.load %arg4[%c0_11, %c0_12, %c32] : memref<16x32x64xf32, #tpu.memory_space<vmem>>, vector<16x32x32xf32>
    tpu.vector_store %arg4[%c0_11, %c0_12, %c32], %14 {strides = array<i32>} : memref<16x32x64xf32, #tpu.memory_space<vmem>>, vector<16x32x32xf32>,
    return
  }
  func.func @transform_0(%arg0: i32) -> (i32, i32, i32) {
    %c0_i32 = arith.constant 0 : i32
    %c0_i32_0 = arith.constant 0 : i32
    %c0_i32_1 = arith.constant 0 : i32
    return %arg0, %c0_i32, %c0_i32_0 : i32, i32, i32
  }
  func.func @transform_1(%arg0: i32) -> (i32, i32) {
    %c0_i32 = arith.constant 0 : i32
    %c0_i32_0 = arith.constant 0 : i32
    %c0_i32_1 = arith.constant 0 : i32
    return %c0_i32, %c0_i32_0 : i32, i32
  }
  func.func @transform_2(%arg0: i32) -> (i32, i32) {
    %c0_i32 = arith.constant 0 : i32
    %c0_i32_0 = arith.constant 0 : i32
    %c0_i32_1 = arith.constant 0 : i32
    return %c0_i32, %c0_i32_0 : i32, i32
  }
  func.func @transform_3(%arg0: i32) -> (i32, i32, i32) {
    %c0_i32 = arith.constant 0 : i32
    %c0_i32_0 = arith.constant 0 : i32
    %c0_i32_1 = arith.constant 0 : i32
    return %arg0, %c0_i32, %c0_i32_0 : i32, i32, i32
  }
}

</mosaic_0001>

<bundles_post_ra>
// kernel: pppfn_layer_forward.1
= control target key start
LH: loop header
LB: loop body
LE: loop exit
PB: predicated region body
PF: predicated region fallthrough
CT: control target
= control target key end

     0   :  { %vm87_vm0 = vcmask 64512   ;;  %s2028_s0 = inlined_call_operand.vmem [shape: f32[16,32,8], index: 0, kind: input, shape index: {}]   ;;  %s2029_s1 = inlined_call_operand.vmem [shape: f32[8,32], index: 1, kind: input, shape index: {}]   ;;  %s2030_s2 = inlined_call_operand.vmem [shape: f32[1,32], index: 2, kind: input, shape index: {}]   ;;  %s2031_s3 = inlined_call_operand.hbm [shape: f32[16,32,64], index: 3, kind: output, shape index: {}]  }
   0x1   :  { %v79_v0 = vld [vmem:[%s2029_s1] sm:$0xff]  ;;  %v16_v3 = vld [vmem:[%s2028_s0 + $0x8] sm:$0xff]  ;;  %v17_v5 = vld [vmem:[%s2028_s0 + $0x10] sm:$0xff] }
   0x2   :  { %v15_v1 = vld [vmem:[%s2028_s0] sm:$0xff]  ;;  %1277 = vmatprep.subr.mxu0 %v79_v0  ;;  %1375 = vmatprep.subr.mxu1 %v79_v0  ;;  %v48_v4 = vld [vmem:[%s2028_s0 + $0x108] sm:$0xff]  ;;  %v49_v6 = vld [vmem:[%s2028_s0 + $0x110] sm:$0xff] }
   0x3   :  { %v47_v2 = vld [vmem:[%s2028_s0 + $0x100] sm:$0xff]  ;;  %1278 = vmatpush3.msra.mxu0 %v79_v0  ;;  %1376 = vmatpush3.msra.mxu1 %v79_v0  ;;  %v18_v7 = vld [vmem:[%s2028_s0 + $0x18] sm:$0xff]  ;;  %v20_v11 = vld [vmem:[%s2028_s0 + $0x28] sm:$0xff] }
   0x4   :  { %1279 = vmatprep.mubr.msk.f32.mxu0 %vm87_vm0, %v15_v1  ;;  %1327 = vmatprep.mubr.msk.f32.mxu1 %vm87_vm0, %v47_v2  ;;  %v50_v8 = vld [vmem:[%s2028_s0 + $0x118] sm:$0xff]  ;;  %v19_v9 = vld [vmem:[%s2028_s0 + $0x20] sm:$0xff]  ;;  %v52_v12 = vld [vmem:[%s2028_s0 + $0x128] sm:$0xff] }
   0x5   :  { %1280 = vmatmul.mubr.msk.f32.vlgmr.msra.gmra.mxu0 %vm87_vm0, %v16_v3  ;;  %1328 = vmatmul.mubr.msk.f32.vlgmr.msra.gmra.mxu1 %vm87_vm0, %v48_v4  ;;  %v51_v10 = vld [vmem:[%s2028_s0 + $0x120] sm:$0xff]  ;;  %v21_v13 = vld [vmem:[%s2028_s0 + $0x30] sm:$0xff]  ;;  %v22_v15 = vld [vmem:[%s2028_s0 + $0x38] sm:$0xff] }
   0x6   :  { %1282 = vmatprep.mubr.msk.f32.mxu0 %vm87_vm0, %v17_v5  ;;  %1330 = vmatprep.mubr.msk.f32.mxu1 %vm87_vm0, %v49_v6  ;;  %v53_v14 = vld [vmem:[%s2028_s0 + $0x130] sm:$0xff]  ;;  %v54_v16 = vld [vmem:[%s2028_s0 + $0x138] sm:$0xff]  ;;  %v23_v17 = vld [vmem:[%s2028_s0 + $0x40] sm:$0xff] }
   0x7   :  { %v55_v18 = vld [vmem:[%s2028_s0 + $0x140] sm:$0xff]  ;;  %v24_v19 = vld [vmem:[%s2028_s0 + $0x48] sm:$0xff]  ;;  %v25_v21 = vld [vmem:[%s2028_s0 + $0x50] sm:$0xff] }
   0x8   :  { %v56_v20 = vld [vmem:[%s2028_s0 + $0x148] sm:$0xff]  ;;  %v57_v22 = vld [vmem:[%s2028_s0 + $0x150] sm:$0xff]  ;;  %v26_v23 = vld [vmem:[%s2028_s0 + $0x58] sm:$0xff] }
   0x9   :  { %1283 = vmatmul.mubr.msk.f32.gmra.mxu0 %vm87_vm0, %v18_v7  ;;  %1331 = vmatmul.mubr.msk.f32.gmra.mxu1 %vm87_vm0, %v50_v8  ;;  %v58_v24 = vld [vmem:[%s2028_s0 + $0x158] sm:$0xff] }
   0xa   :  { %1285 = vmatprep.mubr.msk.f32.mxu0 %vm87_vm0, %v19_v9  ;;  %1333 = vmatprep.mubr.msk.f32.mxu1 %vm87_vm0, %v51_v10 }
   0xd   :  { %1286 = vmatmul.mubr.msk.f32.gmra.mxu0 %vm87_vm0, %v20_v11  ;;  %1334 = vmatmul.mubr.msk.f32.gmra.mxu1 %vm87_vm0, %v52_v12 }
   0xe   :  { %1288 = vmatprep.mubr.msk.f32.mxu0 %vm87_vm0, %v21_v13  ;;  %1336 = vmatprep.mubr.msk.f32.mxu1 %vm87_vm0, %v53_v14 }
  0x11   :  { %1289 = vmatmul.mubr.msk.f32.gmra.mxu0 %vm87_vm0, %v22_v15  ;;  %1337 = vmatmul.mubr.msk.f32.gmra.mxu1 %vm87_vm0, %v54_v16 }
  0x12   :  { %1291 = vmatprep.mubr.msk.f32.mxu0 %vm87_vm0, %v23_v17  ;;  %1339 = vmatprep.mubr.msk.f32.mxu1 %vm87_vm0, %v55_v18 }
  0x15   :  { %1292 = vmatmul.mubr.msk.f32.gmra.mxu0 %vm87_vm0, %v24_v19  ;;  %1340 = vmatmul.mubr.msk.f32.gmra.mxu1 %vm87_vm0, %v56_v20 }
  0x16   :  { %1294 = vmatprep.mubr.msk.f32.mxu0 %vm87_vm0, %v25_v21  ;;  %1342 = vmatprep.mubr.msk.f32.mxu1 %vm87_vm0, %v57_v22 }
  0x17   :  { %8 = vsyncpa [#allocation3], 0  ;;  %v27_v25 = vld [vmem:[%s2028_s0 + $0x60] sm:$0xff]  ;;  %v28_v27 = vld [vmem:[%s2028_s0 + $0x68] sm:$0xff]  ;;  %vm729_vm1 = vcmask 261120   ;;  %vm1066_vm2 = vcmask 523520  }
  0x18   :  { %v59_v26 = vld [vmem:[%s2028_s0 + $0x160] sm:$0xff]  ;;  %v60_v28 = vld [vmem:[%s2028_s0 + $0x168] sm:$0xff]  ;;  %v29_v29 = vld [vmem:[%s2028_s0 + $0x70] sm:$0xff] }
  0x19   :  { %1295 = vmatmul.mubr.msk.f32.gmra.mxu0 %vm87_vm0, %v26_v23  ;;  %1343 = vmatmul.mubr.msk.f32.gmra.mxu1 %vm87_vm0, %v58_v24  ;;  %v61_v30 = vld [vmem:[%s2028_s0 + $0x170] sm:$0xff]  ;;  %v30_v31 = vld [vmem:[%s2028_s0 + $0x78] sm:$0xff]  ;;  %v31_v33 = vld [vmem:[%s2028_s0 + $0x80] sm:$0xff] }
  0x1a   :  { %1297 = vmatprep.mubr.msk.f32.mxu0 %vm87_vm0, %v27_v25  ;;  %1345 = vmatprep.mubr.msk.f32.mxu1 %vm87_vm0, %v59_v26  ;;  %v62_v32 = vld [vmem:[%s2028_s0 + $0x178] sm:$0xff]  ;;  %v63_v34 = vld [vmem:[%s2028_s0 + $0x180] sm:$0xff]  ;;  %v32_v35 = vld [vmem:[%s2028_s0 + $0x88] sm:$0xff] }
  0x1b   :  { %v64_v36 = vld [vmem:[%s2028_s0 + $0x188] sm:$0xff]  ;;  %v33_v37 = vld [vmem:[%s2028_s0 + $0x90] sm:$0xff]  ;;  %v34_v39 = vld [vmem:[%s2028_s0 + $0x98] sm:$0xff] }
  0x1c   :  { %v65_v38 = vld [vmem:[%s2028_s0 + $0x190] sm:$0xff]  ;;  %v66_v40 = vld [vmem:[%s2028_s0 + $0x198] sm:$0xff]  ;;  %v35_v41 = vld [vmem:[%s2028_s0 + $0xa0] sm:$0xff] }
  0x1d   :  { %1298 = vmatmul.mubr.msk.f32.gmra.mxu0 %vm87_vm0, %v28_v27  ;;  %1346 = vmatmul.mubr.msk.f32.gmra.mxu1 %vm87_vm0, %v60_v28  ;;  %v67_v42 = vld [vmem:[%s2028_s0 + $0x1a0] sm:$0xff]  ;;  %v36_v43 = vld [vmem:[%s2028_s0 + $0xa8] sm:$0xff]  ;;  %v37_v45 = vld [vmem:[%s2028_s0 + $0xb0] sm:$0xff] }
  0x1e   :  { %1300 = vmatprep.mubr.msk.f32.mxu0 %vm87_vm0, %v29_v29  ;;  %1348 = vmatprep.mubr.msk.f32.mxu1 %vm87_vm0, %v61_v30  ;;  %v68_v44 = vld [vmem:[%s2028_s0 + $0x1a8] sm:$0xff]  ;;  %v69_v46 = vld [vmem:[%s2028_s0 + $0x1b0] sm:$0xff]  ;;  %v38_v47 = vld [vmem:[%s2028_s0 + $0xb8] sm:$0xff] }
  0x1f   :  { %v70_v48 = vld [vmem:[%s2028_s0 + $0x1b8] sm:$0xff]  ;;  %v39_v49 = vld [vmem:[%s2028_s0 + $0xc0] sm:$0xff]  ;;  %v40_v51 = vld [vmem:[%s2028_s0 + $0xc8] sm:$0xff] }
  0x20   :  { %v71_v50 = vld [vmem:[%s2028_s0 + $0x1c0] sm:$0xff]  ;;  %v72_v52 = vld [vmem:[%s2028_s0 + $0x1c8] sm:$0xff]  ;;  %v41_v53 = vld [vmem:[%s2028_s0 + $0xd0] sm:$0xff] }
  0x21   :  { %1301 = vmatmul.mubr.msk.f32.gmra.mxu0 %vm87_vm0, %v30_v31  ;;  %1349 = vmatmul.mubr.msk.f32.gmra.mxu1 %vm87_vm0, %v62_v32  ;;  %v73_v54 = vld [vmem:[%s2028_s0 + $0x1d0] sm:$0xff]  ;;  %v42_v55 = vld [vmem:[%s2028_s0 + $0xd8] sm:$0xff]  ;;  %v43_v57 = vld [vmem:[%s2028_s0 + $0xe0] sm:$0xff] }
  0x22   :  { %1303 = vmatprep.mubr.msk.f32.mxu0 %vm87_vm0, %v31_v33  ;;  %1351 = vmatprep.mubr.msk.f32.mxu1 %vm87_vm0, %v63_v34  ;;  %v74_v56 = vld [vmem:[%s2028_s0 + $0x1d8] sm:$0xff]  ;;  %v75_v58 = vld [vmem:[%s2028_s0 + $0x1e0] sm:$0xff]  ;;  %v44_v59 = vld [vmem:[%s2028_s0 + $0xe8] sm:$0xff] }
  0x23   :  { %v76_v60 = vld [vmem:[%s2028_s0 + $0x1e8] sm:$0xff]  ;;  %v45_v61 = vld [vmem:[%s2028_s0 + $0xf0] sm:$0xff]  ;;  %v46_v63 = vld [vmem:[%s2028_s0 + $0xf8] sm:$0xff] }
  0x24   :  { %v77_v62 = vld [vmem:[%s2028_s0 + $0x1f0] sm:$0xff]  ;;  %v78_v0 = vld [vmem:[%s2028_s0 + $0x1f8] sm:$0xff]  ;;  %v1689_v1 = vld [vmem:[%s2030_s2] ss:$0 sm:$0xff]  ;;  %s1403_s0 = smov 32   ;;  %s1404_s2 = smov [#allocation2]  }
  0x25   :  { %1304 = vmatmul.mubr.msk.f32.gmra.mxu0 %vm87_vm0, %v32_v35  ;;  %1352 = vmatmul.mubr.msk.f32.gmra.mxu1 %vm87_vm0, %v64_v36  ;;  %s1136_s4 = sshll.u32 %s1404_s2, 4  ;;  %s1137_s4 = int_to_ptr.vmem [resolvable:$true] %s1136_s4 }
  0x26   :  { %1306 = vmatprep.mubr.msk.f32.mxu0 %vm87_vm0, %v33_v37  ;;  %1354 = vmatprep.mubr.msk.f32.mxu1 %vm87_vm0, %v65_v38  ;;  %s1381_s5 = scalar_lea.vmem %s1137_s4, 8192  ;;  %p1386_p1 = scmp.lt.s32.totalorder %s1137_s4, %s1137_s4 }
  0x27   :  { %p1382_p0 = scmp.ne.s32.totalorder %s1137_s4, %s1381_s5  ;;  %p1387_p2 = scmp.lt.s32.totalorder %s1381_s5, %s1381_s5 }
  0x29   :  { %1307 = vmatmul.mubr.msk.f32.gmra.mxu0 %vm87_vm0, %v34_v39  ;;  %1355 = vmatmul.mubr.msk.f32.gmra.mxu1 %vm87_vm0, %v66_v40  ;;  %p1388_p3 = por %p1387_p2, %p1386_p1 }
  0x2a   :  { %1309 = vmatprep.mubr.msk.f32.mxu0 %vm87_vm0, %v35_v41  ;;  %1357 = vmatprep.mubr.msk.f32.mxu1 %vm87_vm0, %v67_v42 }
  0x2b   :  { %p1389_p4 = pnand %p1388_p3, %p1382_p0 }
  0x2d   :  { %1310 = vmatmul.mubr.msk.f32.gmra.mxu0 %vm87_vm0, %v36_v43  ;;  %1358 = vmatmul.mubr.msk.f32.gmra.mxu1 %vm87_vm0, %v68_v44 }
  0x2e   :  { %1312 = vmatprep.mubr.msk.f32.mxu0 %vm87_vm0, %v37_v45  ;;  %1360 = vmatprep.mubr.msk.f32.mxu1 %vm87_vm0, %v69_v46 }
  0x31   :  { %1313 = vmatmul.mubr.msk.f32.gmra.mxu0 %vm87_vm0, %v38_v47  ;;  %1361 = vmatmul.mubr.msk.f32.gmra.mxu1 %vm87_vm0, %v70_v48 }
  0x32   :  { %1315 = vmatprep.mubr.msk.f32.mxu0 %vm87_vm0, %v39_v49  ;;  %1363 = vmatprep.mubr.msk.f32.mxu1 %vm87_vm0, %v71_v50 }
  0x35   :  { %1316 = vmatmul.mubr.msk.f32.gmra.mxu0 %vm87_vm0, %v40_v51  ;;  %1364 = vmatmul.mubr.msk.f32.gmra.mxu1 %vm87_vm0, %v72_v52 }
  0x36   :  { %1318 = vmatprep.mubr.msk.f32.mxu0 %vm87_vm0, %v41_v53  ;;  %1366 = vmatprep.mubr.msk.f32.mxu1 %vm87_vm0, %v73_v54 }
  0x39   :  { %1319 = vmatmul.mubr.msk.f32.gmra.mxu0 %vm87_vm0, %v42_v55  ;;  %1367 = vmatmul.mubr.msk.f32.gmra.mxu1 %vm87_vm0, %v74_v56 }
  0x3a   :  { %1321 = vmatprep.mubr.msk.f32.mxu0 %vm87_vm0, %v43_v57  ;;  %1369 = vmatprep.mubr.msk.f32.mxu1 %vm87_vm0, %v75_v58 }
  0x3d   :  { %1322 = vmatmul.mubr.msk.f32.gmra.mxu0 %vm87_vm0, %v44_v59  ;;  %1370 = vmatmul.mubr.msk.f32.gmra.mxu1 %vm87_vm0, %v76_v60 }
  0x3e   :  { %1324 = vmatprep.mubr.msk.f32.mxu0 %vm87_vm0, %v45_v61  ;;  %1372 = vmatprep.mubr.msk.f32.mxu1 %vm87_vm0, %v77_v62 }
  0x41   :  { %1325 = vmatmul.mubr.msk.f32.gmra.mxu0 %vm87_vm0, %v46_v63  ;;  %1373 = vmatmul.mubr.msk.f32.gmra.mxu1 %vm87_vm0, %v78_v0 }
  0xc5   :  { %v1281_v2 = vpop.f32.mrf.mxu0  ;;  %v1329_v3 = vpop.f32.mrf.mxu1 }
  0xc6   :  { %v352_v4 = vadd.f32 %v1281_v2, %v1689_v1  ;;  %v512_v5 = vadd.f32 %v1329_v3, %v1689_v1 }
  0xc7   :  { %v346_v6 = vpop.f32.mrf.mxu0  ;;  %v506_v7 = vpop.f32.mrf.mxu1 }
  0xc8   :  { %v666_v8 = vmax.f32 %v352_v4, 0.0  ;;  %v698_v9 = vmax.f32 %v512_v5, 0.0  ;;  %v347_v10 = vadd.f32 %v1689_v1, %v346_v6  ;;  %v507_v11 = vadd.f32 %v1689_v1, %v506_v7 }
  0xc9   :  { %v1284_v12 = vpop.f32.mrf.mxu0  ;;  %v1332_v13 = vpop.f32.mrf.mxu1 }
  0xca   :  { %939 = vst.msk [vmem:[#allocation2 + $0x8] sm:$0xff] %vm729_vm1, %v666_v8  ;;  %v835_v14 = vsel %vm729_vm1, %v698_v9, -inf  ;;  %971 = vst.msk [vmem:[#allocation2 + $0x108] sm:$0xff] %vm729_vm1, %v698_v9  ;;  %v665_v15 = vmax.f32 %v347_v10, 0.0  ;;  %v697_v16 = vmax.f32 %v507_v11, 0.0  ;;  %v362_v17 = vadd.f32 %v1284_v12, %v1689_v1 }
  0xcb   :  { %v522_v18 = vadd.f32 %v1332_v13, %v1689_v1  ;;  %v356_v19 = vpop.f32.mrf.mxu0  ;;  %v516_v20 = vpop.f32.mrf.mxu1  ;;  %v731_v25 = vsel %vm729_vm1, %v666_v8, -inf }
  0xcc   :  { %v730_v21 = vsel %vm729_vm1, %v665_v15, -inf  ;;  %938 = vst.msk [vmem:[#allocation2] sm:$0xff] %vm729_vm1, %v665_v15  ;;  %v834_v22 = vsel %vm729_vm1, %v697_v16, -inf  ;;  %970 = vst.msk [vmem:[#allocation2 + $0x100] sm:$0xff] %vm729_vm1, %v697_v16  ;;  %v357_v23 = vadd.f32 %v1689_v1, %v356_v19  ;;  %v517_v24 = vadd.f32 %v1689_v1, %v516_v20 }
  0xcd   :  { %v836_v26 = vmax.f32 %v834_v22, %v835_v14  ;;  %v668_v27 = vmax.f32 %v362_v17, 0.0  ;;  %v700_v28 = vmax.f32 %v522_v18, 0.0  ;;  %v1287_v29 = vpop.f32.mrf.mxu0  ;;  %v1335_v30 = vpop.f32.mrf.mxu1  ;;  %v732_v35 = vmax.f32 %v730_v21, %v731_v25 }
  0xce   :  { %v667_v31 = vmax.f32 %v357_v23, 0.0  ;;  %v699_v32 = vmax.f32 %v517_v24, 0.0  ;;  %v372_v33 = vadd.f32 %v1287_v29, %v1689_v1  ;;  %v532_v34 = vadd.f32 %v1335_v30, %v1689_v1 }
  0xcf   :  { %v735_v36 = vsel %vm729_vm1, %v668_v27, -inf  ;;  %941 = vst.msk [vmem:[#allocation2 + $0x18] sm:$0xff] %vm729_vm1, %v668_v27  ;;  %v839_v37 = vsel %vm729_vm1, %v700_v28, -inf  ;;  %973 = vst.msk [vmem:[#allocation2 + $0x118] sm:$0xff] %vm729_vm1, %v700_v28  ;;  %v366_v38 = vpop.f32.mrf.mxu0  ;;  %v526_v39 = vpop.f32.mrf.mxu1 }
  0xd0   :  { %v733_v40 = vsel %vm729_vm1, %v667_v31, -inf  ;;  %940 = vst.msk [vmem:[#allocation2 + $0x10] sm:$0xff] %vm729_vm1, %v667_v31  ;;  %v837_v41 = vsel %vm729_vm1, %v699_v32, -inf  ;;  %972 = vst.msk [vmem:[#allocation2 + $0x110] sm:$0xff] %vm729_vm1, %v699_v32  ;;  %v670_v42 = vmax.f32 %v372_v33, 0.0  ;;  %v702_v43 = vmax.f32 %v532_v34, 0.0 }
  0xd1   :  { %v734_v44 = vmax.f32 %v732_v35, %v733_v40  ;;  %v838_v45 = vmax.f32 %v836_v26, %v837_v41  ;;  %v367_v46 = vadd.f32 %v1689_v1, %v366_v38  ;;  %v527_v47 = vadd.f32 %v1689_v1, %v526_v39  ;;  %v1290_v48 = vpop.f32.mrf.mxu0  ;;  %v1338_v49 = vpop.f32.mrf.mxu1 }
  0xd2   :  { %v744_v50 = vsel %vm729_vm1, %v670_v42, -inf  ;;  %943 = vst.msk [vmem:[#allocation2 + $0x28] sm:$0xff] %vm729_vm1, %v670_v42  ;;  %v848_v51 = vsel %vm729_vm1, %v702_v43, -inf  ;;  %975 = vst.msk [vmem:[#allocation2 + $0x128] sm:$0xff] %vm729_vm1, %v702_v43  ;;  %v382_v52 = vadd.f32 %v1290_v48, %v1689_v1  ;;  %v542_v53 = vadd.f32 %v1338_v49, %v1689_v1 }
  0xd3   :  { %v736_v54 = vmax.f32 %v734_v44, %v735_v36  ;;  %v840_v55 = vmax.f32 %v838_v45, %v839_v37  ;;  %v669_v56 = vmax.f32 %v367_v46, 0.0  ;;  %v701_v57 = vmax.f32 %v527_v47, 0.0  ;;  %v376_v58 = vpop.f32.mrf.mxu0  ;;  %v536_v59 = vpop.f32.mrf.mxu1 }
  0xd4   :  { %v672_v60 = vmax.f32 %v382_v52, 0.0  ;;  %v704_v61 = vmax.f32 %v542_v53, 0.0  ;;  %v377_v62 = vadd.f32 %v1689_v1, %v376_v58  ;;  %v537_v63 = vadd.f32 %v1689_v1, %v536_v59 }
  0xd5   :  { %v841_v0 = vrot.slane %v840_v55, 4  ;;  %v743_v2 = vsel %vm729_vm1, %v669_v56, -inf  ;;  %942 = vst.msk [vmem:[#allocation2 + $0x20] sm:$0xff] %vm729_vm1, %v669_v56  ;;  %v847_v3 = vsel %vm729_vm1, %v701_v57, -inf  ;;  %974 = vst.msk [vmem:[#allocation2 + $0x120] sm:$0xff] %vm729_vm1, %v701_v57  ;;  %v1293_v4 = vpop.f32.mrf.mxu0  ;;  %v1341_v5 = vpop.f32.mrf.mxu1  ;;  %v737_v6 = vrot.slane %v736_v54, 4 }
  0xd6   :  { %v745_v7 = vmax.f32 %v743_v2, %v744_v50  ;;  %v849_v8 = vmax.f32 %v847_v3, %v848_v51  ;;  %v748_v9 = vsel %vm729_vm1, %v672_v60, -inf  ;;  %945 = vst.msk [vmem:[#allocation2 + $0x38] sm:$0xff] %vm729_vm1, %v672_v60  ;;  %v852_v10 = vsel %vm729_vm1, %v704_v61, -inf  ;;  %977 = vst.msk [vmem:[#allocation2 + $0x138] sm:$0xff] %vm729_vm1, %v704_v61 }
  0xd7   :  { %v671_v11 = vmax.f32 %v377_v62, 0.0  ;;  %v703_v12 = vmax.f32 %v537_v63, 0.0  ;;  %v392_v13 = vadd.f32 %v1293_v4, %v1689_v1  ;;  %v552_v14 = vadd.f32 %v1341_v5, %v1689_v1  ;;  %v386_v15 = vpop.f32.mrf.mxu0  ;;  %v546_v16 = vpop.f32.mrf.mxu1 }
  0xd8   :  { %v387_v17 = vadd.f32 %v1689_v1, %v386_v15  ;;  %v547_v18 = vadd.f32 %v1689_v1, %v546_v16  ;;  %v738_v19 = vmax.f32 %v736_v54, %v737_v6  ;;  %v1739_v20 = vmax.f32 %v840_v55, %v841_v0 }
  0xd9   :  { %v746_v21 = vsel %vm729_vm1, %v671_v11, -inf  ;;  %944 = vst.msk [vmem:[#allocation2 + $0x30] sm:$0xff] %vm729_vm1, %v671_v11  ;;  %v850_v22 = vsel %vm729_vm1, %v703_v12, -inf  ;;  %976 = vst.msk [vmem:[#allocation2 + $0x130] sm:$0xff] %vm729_vm1, %v703_v12  ;;  %v674_v23 = vmax.f32 %v392_v13, 0.0  ;;  %v706_v24 = vmax.f32 %v552_v14, 0.0  ;;  %v1296_v25 = vpop.f32.mrf.mxu0  ;;  %v1344_v26 = vpop.f32.mrf.mxu1 }
  0xda   :  { %v747_v27 = vmax.f32 %v745_v7, %v746_v21  ;;  %v851_v28 = vmax.f32 %v849_v8, %v850_v22  ;;  %v673_v29 = vmax.f32 %v387_v17, 0.0  ;;  %v705_v30 = vmax.f32 %v547_v18, 0.0 }
  0xdb   :  { %v757_v31 = vsel %vm729_vm1, %v674_v23, -inf  ;;  %947 = vst.msk [vmem:[#allocation2 + $0x48] sm:$0xff] %vm729_vm1, %v674_v23  ;;  %v861_v32 = vsel %vm729_vm1, %v706_v24, -inf  ;;  %979 = vst.msk [vmem:[#allocation2 + $0x148] sm:$0xff] %vm729_vm1, %v706_v24  ;;  %v402_v33 = vadd.f32 %v1296_v25, %v1689_v1  ;;  %v562_v34 = vadd.f32 %v1344_v26, %v1689_v1  ;;  %v396_v35 = vpop.f32.mrf.mxu0  ;;  %v556_v36 = vpop.f32.mrf.mxu1 }
  0xdc   :  { %v1751_v37 = vmax.f32 %v747_v27, %v748_v9  ;;  %v1753_v38 = vmax.f32 %v851_v28, %v852_v10  ;;  %v756_v39 = vsel %vm729_vm1, %v673_v29, -inf  ;;  %946 = vst.msk [vmem:[#allocation2 + $0x40] sm:$0xff] %vm729_vm1, %v673_v29  ;;  %v860_v40 = vsel %vm729_vm1, %v705_v30, -inf  ;;  %978 = vst.msk [vmem:[#allocation2 + $0x140] sm:$0xff] %vm729_vm1, %v705_v30 }
  0xdd   :  { %v758_v41 = vmax.f32 %v756_v39, %v757_v31  ;;  %v862_v42 = vmax.f32 %v860_v40, %v861_v32  ;;  %v676_v43 = vmax.f32 %v402_v33, 0.0  ;;  %v708_v44 = vmax.f32 %v562_v34, 0.0  ;;  %v1299_v45 = vpop.f32.mrf.mxu0  ;;  %v1347_v46 = vpop.f32.mrf.mxu1 }
  0xde   :  { %v750_v47 = vrot.slane %v1751_v37, 4  ;;  %v397_v48 = vadd.f32 %v1689_v1, %v396_v35  ;;  %v557_v49 = vadd.f32 %v1689_v1, %v556_v36  ;;  %v412_v50 = vadd.f32 %v1299_v45, %v1689_v1 }
  0xdf   :  { %v761_v51 = vsel %vm729_vm1, %v676_v43, -inf  ;;  %949 = vst.msk [vmem:[#allocation2 + $0x58] sm:$0xff] %vm729_vm1, %v676_v43  ;;  %v865_v52 = vsel %vm729_vm1, %v708_v44, -inf  ;;  %981 = vst.msk [vmem:[#allocation2 + $0x158] sm:$0xff] %vm729_vm1, %v708_v44  ;;  %v572_v53 = vadd.f32 %v1347_v46, %v1689_v1  ;;  %v406_v54 = vpop.f32.mrf.mxu0  ;;  %v566_v55 = vpop.f32.mrf.mxu1  ;;  %v739_v56 = vrot.slane %v738_v19, 2 }
  0xe0   :  { %v675_v57 = vmax.f32 %v397_v48, 0.0  ;;  %v707_v58 = vmax.f32 %v557_v49, 0.0  ;;  %v678_v59 = vmax.f32 %v412_v50, 0.0  ;;  %v407_v60 = vadd.f32 %v1689_v1, %v406_v54 }
  0xe1   :  { %v710_v61 = vmax.f32 %v572_v53, 0.0  ;;  %v567_v62 = vadd.f32 %v1689_v1, %v566_v55  ;;  %v1302_v63 = vpop.f32.mrf.mxu0  ;;  %v1350_v0 = vpop.f32.mrf.mxu1  ;;  %v740_v2 = vmax.f32 %v738_v19, %v739_v56  ;;  %v843_v3 = vrot.slane %v1739_v20, 2 }
  0xe2   :  { %v759_v4 = vsel %vm729_vm1, %v675_v57, -inf  ;;  %948 = vst.msk [vmem:[#allocation2 + $0x50] sm:$0xff] %vm729_vm1, %v675_v57  ;;  %v863_v5 = vsel %vm729_vm1, %v707_v58, -inf  ;;  %980 = vst.msk [vmem:[#allocation2 + $0x150] sm:$0xff] %vm729_vm1, %v707_v58  ;;  %v770_v6 = vsel %vm729_vm1, %v678_v59, -inf  ;;  %v677_v7 = vmax.f32 %v407_v60, 0.0 }
  0xe3   :  { %951 = vst.msk [vmem:[#allocation2 + $0x68] sm:$0xff] %vm729_vm1, %v678_v59  ;;  %v760_v8 = vmax.f32 %v758_v41, %v759_v4  ;;  %v864_v9 = vmax.f32 %v862_v42, %v863_v5  ;;  %v874_v10 = vsel %vm729_vm1, %v710_v61, -inf  ;;  %983 = vst.msk [vmem:[#allocation2 + $0x168] sm:$0xff] %vm729_vm1, %v710_v61  ;;  %v709_v11 = vmax.f32 %v567_v62, 0.0  ;;  %v416_v12 = vpop.f32.mrf.mxu0  ;;  %v576_v13 = vpop.f32.mrf.mxu1 }
  0xe4   :  { %v769_v14 = vsel %vm729_vm1, %v677_v7, -inf  ;;  %950 = vst.msk [vmem:[#allocation2 + $0x60] sm:$0xff] %vm729_vm1, %v677_v7  ;;  %v422_v15 = vadd.f32 %v1302_v63, %v1689_v1  ;;  %v582_v16 = vadd.f32 %v1350_v0, %v1689_v1  ;;  %v741_v17 = vrot.slane %v740_v2, 1 }
  0xe5   :  { %v1783_v18 = vmax.f32 %v760_v8, %v761_v51  ;;  %v1785_v19 = vmax.f32 %v864_v9, %v865_v52  ;;  %v771_v21 = vmax.f32 %v769_v14, %v770_v6  ;;  %v873_v22 = vsel %vm729_vm1, %v709_v11, -inf  ;;  %982 = vst.msk [vmem:[#allocation2 + $0x160] sm:$0xff] %vm729_vm1, %v709_v11  ;;  %v1305_v23 = vpop.f32.mrf.mxu0  ;;  %v1353_v24 = vpop.f32.mrf.mxu1 }
  0xe6   :  { %v875_v25 = vmax.f32 %v873_v22, %v874_v10  ;;  %v680_v26 = vmax.f32 %v422_v15, 0.0  ;;  %v712_v27 = vmax.f32 %v582_v16, 0.0  ;;  %v742_v28 = vmax.f32 %v740_v2, %v741_v17 }
  0xe7   :  { %v763_v29 = vrot.slane %v1783_v18, 4  ;;  %v867_v30 = vrot.slane %v1785_v19, 4  ;;  %v417_v31 = vadd.f32 %v1689_v1, %v416_v12  ;;  %v577_v32 = vadd.f32 %v1689_v1, %v576_v13  ;;  %v426_v33 = vpop.f32.mrf.mxu0  ;;  %v586_v34 = vpop.f32.mrf.mxu1 }
  0xe8   :  { %v774_v35 = vsel %vm729_vm1, %v680_v26, -inf  ;;  %953 = vst.msk [vmem:[#allocation2 + $0x78] sm:$0xff] %vm729_vm1, %v680_v26  ;;  %v878_v36 = vsel %vm729_vm1, %v712_v27, -inf  ;;  %985 = vst.msk [vmem:[#allocation2 + $0x178] sm:$0xff] %vm729_vm1, %v712_v27  ;;  %1018 = vrot.lane.b32.xlu0 %v742_v28, %s1403_s0  ;;  %v432_v39 = vadd.f32 %v1305_v23, %v1689_v1  ;;  %v592_v40 = vadd.f32 %v1353_v24, %v1689_v1 }
  0xe9   :  { %v679_v41 = vmax.f32 %v417_v31, 0.0  ;;  %v711_v42 = vmax.f32 %v577_v32, 0.0  ;;  %v844_v43 = vmax.f32 %v1739_v20, %v843_v3  ;;  %v427_v44 = vadd.f32 %v1689_v1, %v426_v33  ;;  %v1356_v45 = vpop.f32.mrf.mxu1  ;;  %v1308_v46 = vpop.f32.mrf.mxu0 }
  0xea   :  { %v682_v48 = vmax.f32 %v432_v39, 0.0  ;;  %v714_v49 = vmax.f32 %v592_v40, 0.0  ;;  %v587_v50 = vadd.f32 %v1689_v1, %v586_v34  ;;  %v602_v51 = vadd.f32 %v1356_v45, %v1689_v1 }
  0xeb   :  { %v772_v52 = vsel %vm729_vm1, %v679_v41, -inf  ;;  %952 = vst.msk [vmem:[#allocation2 + $0x70] sm:$0xff] %vm729_vm1, %v679_v41  ;;  %v876_v53 = vsel %vm729_vm1, %v711_v42, -inf  ;;  %984 = vst.msk [vmem:[#allocation2 + $0x170] sm:$0xff] %vm729_vm1, %v711_v42  ;;  %v845_v54 = vrot.slane %v844_v43, 1  ;;  %v681_v20 = vmax.f32 %v427_v44, 0.0  ;;  %v436_v55 = vpop.f32.mrf.mxu0  ;;  %v596_v56 = vpop.f32.mrf.mxu1 }
  0xec   :  { %v773_v57 = vmax.f32 %v771_v21, %v772_v52  ;;  %v877_v58 = vmax.f32 %v875_v25, %v876_v53  ;;  %v783_v59 = vsel %vm729_vm1, %v682_v48, -inf  ;;  %955 = vst.msk [vmem:[#allocation2 + $0x88] sm:$0xff] %vm729_vm1, %v682_v48  ;;  %v887_v60 = vsel %vm729_vm1, %v714_v49, -inf  ;;  %987 = vst.msk [vmem:[#allocation2 + $0x188] sm:$0xff] %vm729_vm1, %v714_v49 }
  0xed   :  { %v846_v61 = vmax.f32 %v844_v43, %v845_v54  ;;  %v782_v62 = vsel %vm729_vm1, %v681_v20, -inf  ;;  %954 = vst.msk [vmem:[#allocation2 + $0x80] sm:$0xff] %vm729_vm1, %v681_v20  ;;  %v713_v63 = vmax.f32 %v587_v50, 0.0  ;;  %v716_v0 = vmax.f32 %v602_v51, 0.0  ;;  %v1311_v2 = vpop.f32.mrf.mxu0  ;;  %v1359_v3 = vpop.f32.mrf.mxu1 }
  0xee   :  { %v1814_v4 = vmax.f32 %v773_v57, %v774_v35  ;;  %v1816_v5 = vmax.f32 %v877_v58, %v878_v36  ;;  %v784_v6 = vmax.f32 %v782_v62, %v783_v59  ;;  %v854_v7 = vrot.slane %v1753_v38, 4 }
  0xef   :  { %1034 = vrot.lane.b32.xlu0 %v846_v61, %s1403_s0  ;;  %v886_v8 = vsel %vm729_vm1, %v713_v63, -inf  ;;  %986 = vst.msk [vmem:[#allocation2 + $0x180] sm:$0xff] %vm729_vm1, %v713_v63  ;;  %v891_v9 = vsel %vm729_vm1, %v716_v0, -inf  ;;  %989 = vst.msk [vmem:[#allocation2 + $0x198] sm:$0xff] %vm729_vm1, %v716_v0  ;;  %v442_v10 = vadd.f32 %v1308_v46, %v1689_v1  ;;  %v751_v11 = vmax.f32 %v1751_v37, %v750_v47  ;;  %v446_v12 = vpop.f32.mrf.mxu0  ;;  %v606_v13 = vpop.f32.mrf.mxu1 }
  0xf0   :  { %v776_v14 = vrot.slane %v1814_v4, 4  ;;  %v880_v15 = vrot.slane %v1816_v5, 4  ;;  %v888_v16 = vmax.f32 %v886_v8, %v887_v60  ;;  %v855_v17 = vmax.f32 %v1753_v38, %v854_v7 }
  0xf1   :  { %v684_v21 = vmax.f32 %v442_v10, 0.0  ;;  %v752_v22 = vrot.slane %v751_v11, 2  ;;  %v437_v23 = vadd.f32 %v1689_v1, %v436_v55  ;;  %v597_v24 = vadd.f32 %v1689_v1, %v596_v56  ;;  %v1314_v25 = vpop.f32.mrf.mxu0  ;;  %v1362_v26 = vpop.f32.mrf.mxu1 }
  0xf2   :  { %v856_v27 = vrot.slane %v855_v17, 2  ;;  %v452_v37 = vadd.f32 %v1311_v2, %v1689_v1  ;;  %v612_v47 = vadd.f32 %v1359_v3, %v1689_v1  ;;  %v447_v28 = vadd.f32 %v1689_v1, %v446_v12 }
  0xf3   :  { %v787_v31 = vsel %vm729_vm1, %v684_v21, -inf  ;;  %957 = vst.msk [vmem:[#allocation2 + $0x98] sm:$0xff] %vm729_vm1, %v684_v21  ;;  %v753_v38 = vmax.f32 %v751_v11, %v752_v22  ;;  %v683_v32 = vmax.f32 %v437_v23, 0.0  ;;  %v715_v33 = vmax.f32 %v597_v24, 0.0  ;;  %v456_v34 = vpop.f32.mrf.mxu0  ;;  %v616_v35 = vpop.f32.mrf.mxu1 }
  0xf4   :  { %v857_v36 = vmax.f32 %v855_v17, %v856_v27  ;;  %v686_v39 = vmax.f32 %v452_v37, 0.0  ;;  %v718_v40 = vmax.f32 %v612_v47, 0.0  ;;  %v685_v41 = vmax.f32 %v447_v28, 0.0 }
  0xf5   :  { %v754_v42 = vrot.slane %v753_v38, 1  ;;  %v785_v43 = vsel %vm729_vm1, %v683_v32, -inf  ;;  %956 = vst.msk [vmem:[#allocation2 + $0x90] sm:$0xff] %vm729_vm1, %v683_v32  ;;  %v889_v44 = vsel %vm729_vm1, %v715_v33, -inf  ;;  %988 = vst.msk [vmem:[#allocation2 + $0x190] sm:$0xff] %vm729_vm1, %v715_v33  ;;  %v607_v45 = vadd.f32 %v1689_v1, %v606_v13  ;;  %v1317_v46 = vpop.f32.mrf.mxu0  ;;  %v1365_v48 = vpop.f32.mrf.mxu1 }
  0xf6   :  { %v858_v49 = vrot.slane %v857_v36, 1  ;;  %v786_v50 = vmax.f32 %v784_v6, %v785_v43  ;;  %v890_v51 = vmax.f32 %v888_v16, %v889_v44  ;;  %v796_v52 = vsel %vm729_vm1, %v686_v39, -inf  ;;  %959 = vst.msk [vmem:[#allocation2 + $0xa8] sm:$0xff] %vm729_vm1, %v686_v39  ;;  %991 = vst.msk [vmem:[#allocation2 + $0x1a8] sm:$0xff] %vm729_vm1, %v718_v40 }
  0xf7   :  { %958 = vst.msk [vmem:[#allocation2 + $0xa0] sm:$0xff] %vm729_vm1, %v685_v41  ;;  %v755_v53 = vmax.f32 %v753_v38, %v754_v42  ;;  %v900_v54 = vsel %vm729_vm1, %v718_v40, -inf  ;;  %v795_v20 = vsel %vm729_vm1, %v685_v41, -inf  ;;  %v717_v55 = vmax.f32 %v607_v45, 0.0  ;;  %v466_v56 = vpop.f32.mrf.mxu0  ;;  %v626_v57 = vpop.f32.mrf.mxu1 }
  0xf8   :  { %v859_v58 = vmax.f32 %v857_v36, %v858_v49  ;;  %v1849_v59 = vmax.f32 %v786_v50, %v787_v31  ;;  %v1851_v60 = vmax.f32 %v890_v51, %v891_v9  ;;  %v797_v61 = vmax.f32 %v795_v20, %v796_v52 }
  0xf9   :  { %1020 = vrot.lane.b32.xlu0 %v755_v53, %s1403_s0  ;;  %v899_v62 = vsel %vm729_vm1, %v717_v55, -inf  ;;  %990 = vst.msk [vmem:[#allocation2 + $0x1a0] sm:$0xff] %vm729_vm1, %v717_v55  ;;  %v462_v63 = vadd.f32 %v1314_v25, %v1689_v1  ;;  %v622_v0 = vadd.f32 %v1362_v26, %v1689_v1  ;;  %v764_v2 = vmax.f32 %v1783_v18, %v763_v29  ;;  %v1320_v3 = vpop.f32.mrf.mxu0  ;;  %v1368_v10 = vpop.f32.mrf.mxu1 }
  0xfa   :  { %1036 = vrot.lane.b32.xlu1 %v859_v58, %s1403_s0  ;;  %v789_v6 = vrot.slane %v1849_v59, 4  ;;  %v893_v7 = vrot.slane %v1851_v60, 4  ;;  %v901_v8 = vmax.f32 %v899_v62, %v900_v54  ;;  %v868_v9 = vmax.f32 %v1785_v19, %v867_v30 }
  0xfb   :  { %v688_v11 = vmax.f32 %v462_v63, 0.0  ;;  %v720_v12 = vmax.f32 %v622_v0, 0.0  ;;  %v765_v13 = vrot.slane %v764_v2, 2  ;;  %v457_v16 = vadd.f32 %v1689_v1, %v456_v34  ;;  %v476_v24 = vpop.f32.mrf.mxu0  ;;  %v636_v47 = vpop.f32.mrf.mxu1 }
  0xfc   :  { %v869_v17 = vrot.slane %v868_v9, 2  ;;  %v617_v18 = vadd.f32 %v1689_v1, %v616_v35  ;;  %v472_v29 = vadd.f32 %v1317_v46, %v1689_v1  ;;  %v632_v21 = vadd.f32 %v1365_v48, %v1689_v1 }
  0xfd   :  { %v800_v22 = vsel %vm729_vm1, %v688_v11, -inf  ;;  %961 = vst.msk [vmem:[#allocation2 + $0xb8] sm:$0xff] %vm729_vm1, %v688_v11  ;;  %v904_v23 = vsel %vm729_vm1, %v720_v12, -inf  ;;  %993 = vst.msk [vmem:[#allocation2 + $0x1b8] sm:$0xff] %vm729_vm1, %v720_v12  ;;  %v766_v19 = vmax.f32 %v764_v2, %v765_v13  ;;  %v687_v30 = vmax.f32 %v457_v16, 0.0  ;;  %v1323_v43 = vpop.f32.mrf.mxu0  ;;  %v1371_v49 = vpop.f32.mrf.mxu1 }
  0xfe   :  { %v870_v25 = vmax.f32 %v868_v9, %v869_v17  ;;  %v719_v26 = vmax.f32 %v617_v18, 0.0  ;;  %v690_v27 = vmax.f32 %v472_v29, 0.0  ;;  %v722_v37 = vmax.f32 %v632_v21, 0.0 }
  0xff   :  { %v767_v28 = vrot.slane %v766_v19, 1  ;;  %v798_v31 = vsel %vm729_vm1, %v687_v30, -inf  ;;  %960 = vst.msk [vmem:[#allocation2 + $0xb0] sm:$0xff] %vm729_vm1, %v687_v30  ;;  %v467_v38 = vadd.f32 %v1689_v1, %v466_v56  ;;  %v627_v32 = vadd.f32 %v1689_v1, %v626_v57  ;;  %v486_v63 = vpop.f32.mrf.mxu0 }
 0x100   :  { %v871_v33 = vrot.slane %v870_v25, 1  ;;  %v799_v34 = vmax.f32 %v797_v61, %v798_v31  ;;  %v902_v35 = vsel %vm729_vm1, %v719_v26, -inf  ;;  %992 = vst.msk [vmem:[#allocation2 + $0x1b0] sm:$0xff] %vm729_vm1, %v719_v26  ;;  %v809_v36 = vsel %vm729_vm1, %v690_v27, -inf  ;;  %963 = vst.msk [vmem:[#allocation2 + $0xc8] sm:$0xff] %vm729_vm1, %v690_v27 }
 0x101   :  { %995 = vst.msk [vmem:[#allocation2 + $0x1c8] sm:$0xff] %vm729_vm1, %v722_v37  ;;  %v768_v39 = vmax.f32 %v766_v19, %v767_v28  ;;  %v903_v40 = vmax.f32 %v901_v8, %v902_v35  ;;  %v913_v41 = vsel %vm729_vm1, %v722_v37, -inf  ;;  %v689_v42 = vmax.f32 %v467_v38, 0.0 }
 0x102   :  { %v872_v44 = vmax.f32 %v870_v25, %v871_v33  ;;  %v1885_v45 = vmax.f32 %v799_v34, %v800_v22  ;;  %v721_v46 = vmax.f32 %v627_v32, 0.0  ;;  %v482_v48 = vadd.f32 %v1320_v3, %v1689_v1  ;;  %v646_v3 = vpop.f32.mrf.mxu1 }
 0x103   :  { %1022 = vrot.lane.b32.xlu1 %v768_v39, %s1403_s0  ;;  %v1889_v50 = vmax.f32 %v903_v40, %v904_v23  ;;  %v808_v51 = vsel %vm729_vm1, %v689_v42, -inf  ;;  %962 = vst.msk [vmem:[#allocation2 + $0xc0] sm:$0xff] %vm729_vm1, %v689_v42  ;;  %v642_v52 = vadd.f32 %v1368_v10, %v1689_v1  ;;  %v777_v53 = vmax.f32 %v1814_v4, %v776_v14  ;;  %v1326_v23 = vpop.f32.mrf.mxu0 }
 0x104   :  { %1038 = vrot.lane.b32.xlu0 %v872_v44, %s1403_s0  ;;  %v802_v54 = vrot.slane %v1885_v45, 4  ;;  %v810_v20 = vmax.f32 %v808_v51, %v809_v36  ;;  %v912_v55 = vsel %vm729_vm1, %v721_v46, -inf  ;;  %994 = vst.msk [vmem:[#allocation2 + $0x1c0] sm:$0xff] %vm729_vm1, %v721_v46  ;;  %v692_v56 = vmax.f32 %v482_v48, 0.0 }
 0x105   :  { %v906_v57 = vrot.slane %v1889_v50, 4  ;;  %v914_v58 = vmax.f32 %v912_v55, %v913_v41  ;;  %v724_v61 = vmax.f32 %v642_v52, 0.0  ;;  %v778_v62 = vrot.slane %v777_v53, 2  ;;  %v496_v36 = vpop.f32.mrf.mxu0 }
 0x106   :  { %v813_v0 = vsel %vm729_vm1, %v692_v56, -inf  ;;  %965 = vst.msk [vmem:[#allocation2 + $0xd8] sm:$0xff] %vm729_vm1, %v692_v56  ;;  %v477_v4 = vadd.f32 %v1689_v1, %v476_v24  ;;  %v637_v14 = vadd.f32 %v1689_v1, %v636_v47  ;;  %v492_v2 = vadd.f32 %v1323_v43, %v1689_v1  ;;  %v1374_v24 = vpop.f32.mrf.mxu1 }
 0x107   :  { %v917_v8 = vsel %vm729_vm1, %v724_v61, -inf  ;;  %997 = vst.msk [vmem:[#allocation2 + $0x1d8] sm:$0xff] %vm729_vm1, %v724_v61  ;;  %v779_v9 = vmax.f32 %v777_v53, %v778_v62  ;;  %v652_v10 = vadd.f32 %v1371_v49, %v1689_v1  ;;  %v881_v11 = vmax.f32 %v1816_v5, %v880_v15 }
 0x108   :  { %v691_v12 = vmax.f32 %v477_v4, 0.0  ;;  %v723_v13 = vmax.f32 %v637_v14, 0.0  ;;  %v694_v16 = vmax.f32 %v492_v2, 0.0  ;;  %v487_v17 = vadd.f32 %v1689_v1, %v486_v63  ;;  %v656_v43 = vpop.f32.mrf.mxu1 }
 0x109   :  { %v780_v18 = vrot.slane %v779_v9, 1  ;;  %v726_v29 = vmax.f32 %v652_v10, 0.0  ;;  %v882_v21 = vrot.slane %v881_v11, 2  ;;  %v647_v22 = vadd.f32 %v1689_v1, %v646_v3 }
 0x10a   :  { %v811_v19 = vsel %vm729_vm1, %v691_v12, -inf  ;;  %964 = vst.msk [vmem:[#allocation2 + $0xd0] sm:$0xff] %vm729_vm1, %v691_v12  ;;  %v915_v30 = vsel %vm729_vm1, %v723_v13, -inf  ;;  %996 = vst.msk [vmem:[#allocation2 + $0x1d0] sm:$0xff] %vm729_vm1, %v723_v13  ;;  %v822_v5 = vsel %vm729_vm1, %v694_v16, -inf  ;;  %v693_v15 = vmax.f32 %v487_v17, 0.0 }
 0x10b   :  { %967 = vst.msk [vmem:[#allocation2 + $0xe8] sm:$0xff] %vm729_vm1, %v694_v16  ;;  %v781_v25 = vmax.f32 %v779_v9, %v780_v18  ;;  %v812_v26 = vmax.f32 %v810_v20, %v811_v19  ;;  %v916_v27 = vmax.f32 %v914_v58, %v915_v30  ;;  %v926_v37 = vsel %vm729_vm1, %v726_v29, -inf  ;;  %999 = vst.msk [vmem:[#allocation2 + $0x1e8] sm:$0xff] %vm729_vm1, %v726_v29 }
 0x10c   :  { %v883_v47 = vmax.f32 %v881_v11, %v882_v21  ;;  %v821_v28 = vsel %vm729_vm1, %v693_v15, -inf  ;;  %966 = vst.msk [vmem:[#allocation2 + $0xe0] sm:$0xff] %vm729_vm1, %v693_v15  ;;  %v725_v31 = vmax.f32 %v647_v22, 0.0  ;;  %v502_v38 = vadd.f32 %v1326_v23, %v1689_v1 }
 0x10d   :  { %1024 = vrot.lane.b32.xlu1 %v781_v25, %s1403_s0  ;;  %v814_v32 = vmax.f32 %v812_v26, %v813_v0  ;;  %v918_v33 = vmax.f32 %v916_v27, %v917_v8  ;;  %v823_v34 = vmax.f32 %v821_v28, %v822_v5  ;;  %v662_v35 = vadd.f32 %v1374_v24, %v1689_v1 }
 0x10e   :  { %v884_v39 = vrot.slane %v883_v47, 1  ;;  %v925_v40 = vsel %vm729_vm1, %v725_v31, -inf  ;;  %998 = vst.msk [vmem:[#allocation2 + $0x1e0] sm:$0xff] %vm729_vm1, %v725_v31  ;;  %v696_v41 = vmax.f32 %v502_v38, 0.0  ;;  %v790_v42 = vmax.f32 %v1849_v59, %v789_v6 }
 0x10f   :  { %v815_v44 = vrot.slane %v814_v32, 4  ;;  %v919_v46 = vrot.slane %v918_v33, 4  ;;  %v927_v48 = vmax.f32 %v925_v40, %v926_v37  ;;  %v728_v49 = vmax.f32 %v662_v35, 0.0 }
 0x110   :  { %v885_v51 = vmax.f32 %v883_v47, %v884_v39  ;;  %v826_v52 = vsel %vm729_vm1, %v696_v41, -inf  ;;  %969 = vst.msk [vmem:[#allocation2 + $0xf8] sm:$0xff] %vm729_vm1, %v696_v41  ;;  %v791_v53 = vrot.slane %v790_v42, 2  ;;  %v497_v20 = vadd.f32 %v1689_v1, %v496_v36 }
 0x111   :  { %v930_v55 = vsel %vm729_vm1, %v728_v49, -inf  ;;  %1001 = vst.msk [vmem:[#allocation2 + $0x1f8] sm:$0xff] %vm729_vm1, %v728_v49  ;;  %v657_v56 = vadd.f32 %v1689_v1, %v656_v43  ;;  %v894_v59 = vmax.f32 %v1851_v60, %v893_v7  ;;  %v803_v6 = vmax.f32 %v1885_v45, %v802_v54 }
 0x112   :  { %1040 = vrot.lane.b32.xlu1 %v885_v51, %s1403_s0  ;;  %v792_v58 = vmax.f32 %v790_v42, %v791_v53  ;;  %v695_v61 = vmax.f32 %v497_v20, 0.0  ;;  %v907_v62 = vmax.f32 %v1889_v50, %v906_v57  ;;  %v816_v63 = vmax.f32 %v814_v32, %v815_v44 }
 0x113   :  { %v727_v0 = vmax.f32 %v657_v56, 0.0  ;;  %v895_v4 = vrot.slane %v894_v59, 2  ;;  %v804_v1 = vrot.slane %v803_v6, 2  ;;  %v920_v14 = vmax.f32 %v918_v33, %v919_v46 }
 0x114   :  { %v793_v2 = vrot.slane %v792_v58, 1  ;;  %v824_v60 = vsel %vm729_vm1, %v695_v61, -inf  ;;  %968 = vst.msk [vmem:[#allocation2 + $0xf0] sm:$0xff] %vm729_vm1, %v695_v61  ;;  %v908_v7 = vrot.slane %v907_v62, 2  ;;  %v817_v45 = vrot.slane %v816_v63, 2 }
 0x115   :  { %v825_v54 = vmax.f32 %v823_v34, %v824_v60  ;;  %v928_v3 = vsel %vm729_vm1, %v727_v0, -inf  ;;  %1000 = vst.msk [vmem:[#allocation2 + $0x1f0] sm:$0xff] %vm729_vm1, %v727_v0  ;;  %v896_v8 = vmax.f32 %v894_v59, %v895_v4  ;;  %v805_v9 = vmax.f32 %v803_v6, %v804_v1 }
 0x116   :  { %v794_v50 = vmax.f32 %v792_v58, %v793_v2  ;;  %v929_v57 = vmax.f32 %v927_v48, %v928_v3  ;;  %v909_v10 = vmax.f32 %v907_v62, %v908_v7  ;;  %v818_v11 = vmax.f32 %v816_v63, %v817_v45 }
 0x117   :  { %v827_v12 = vmax.f32 %v825_v54, %v826_v52  ;;  %v897_v13 = vrot.slane %v896_v8, 1  ;;  %v806_v16 = vrot.slane %v805_v9, 1  ;;  %v921_v17 = vrot.slane %v920_v14, 2 }
 0x118   :  { %1026 = vrot.lane.b32.xlu0 %v794_v50, %s1403_s0  ;;  %v931_v18 = vmax.f32 %v929_v57, %v930_v55  ;;  %v819_v29 = vrot.slane %v818_v11, 1  ;;  %v910_v23 = vrot.slane %v909_v10, 1 }
 0x119   :  { %v828_v21 = vrot.slane %v827_v12, 4  ;;  %v807_v22 = vmax.f32 %v805_v9, %v806_v16  ;;  %v898_v30 = vmax.f32 %v896_v8, %v897_v13  ;;  %v922_v5 = vmax.f32 %v920_v14, %v921_v17 }
 0x11a   :  { %v932_v19 = vrot.slane %v931_v18, 4  ;;  %v820_v24 = vmax.f32 %v818_v11, %v819_v29  ;;  %v911_v26 = vmax.f32 %v909_v10, %v910_v23 }
 0x11b   :  { %1028 = vrot.lane.b32.xlu1 %v807_v22, %s1403_s0  ;;  %v829_v15 = vmax.f32 %v827_v12, %v828_v21  ;;  %v923_v37 = vrot.slane %v922_v5, 1 }
 0x11c   :  { %1042 = vrot.lane.b32.xlu0 %v898_v30, %s1403_s0  ;;  %v933_v25 = vmax.f32 %v931_v18, %v932_v19 }
 0x11d   :  { %v830_v27 = vrot.slane %v829_v15, 2  ;;  %v924_v32 = vmax.f32 %v922_v5, %v923_v37 }
 0x11e   :  { %v934_v47 = vrot.slane %v933_v25, 2 }
 0x11f   :  { %1044 = vrot.lane.b32.xlu1 %v911_v26, %s1403_s0  ;;  %v831_v28 = vmax.f32 %v829_v15, %v830_v27 }
 0x120   :  { %1030 = vrot.lane.b32.xlu0 %v820_v24, %s1403_s0  ;;  %v935_v31 = vmax.f32 %v933_v25, %v934_v47 }
 0x121   :  { %v832_v38 = vrot.slane %v831_v28, 1 }
 0x122   :  { %v936_v34 = vrot.slane %v935_v31, 1 }
 0x123   :  { %v833_v33 = vmax.f32 %v831_v28, %v832_v38 }
 0x124   :  { %1046 = vrot.lane.b32.xlu0 %v924_v32, %s1403_s0  ;;  %v937_v35 = vmax.f32 %v935_v31, %v936_v34 }
 0x125   :  { %1032 = vrot.lane.b32.xlu1 %v833_v33, %s1403_s0 }
 0x129   :  { %1048 = vrot.lane.b32.xlu1 %v937_v35, %s1403_s0 }
 0x15a   :  { %v1019_v36 = vpop.permute.xlu0 %1018 }
 0x15b   :  { %1067 = vst.msk [vmem:[#allocation2] sm:$0xff] %vm1066_vm2, %v1019_v36  ;;  %1068 = vst.msk [vmem:[#allocation2 + $0x8] sm:$0xff] %vm1066_vm2, %v1019_v36 }
 0x15c   :  { %1069 = vst.msk [vmem:[#allocation2 + $0x10] sm:$0xff] %vm1066_vm2, %v1019_v36  ;;  %1070 = vst.msk [vmem:[#allocation2 + $0x18] sm:$0xff] %vm1066_vm2, %v1019_v36 }
 0x161   :  { %v1035_v39 = vpop.permute.xlu0 %1034 }
 0x162   :  { %1099 = vst.msk [vmem:[#allocation2 + $0x100] sm:$0xff] %vm1066_vm2, %v1035_v39  ;;  %1100 = vst.msk [vmem:[#allocation2 + $0x108] sm:$0xff] %vm1066_vm2, %v1035_v39 }
 0x163   :  { %1101 = vst.msk [vmem:[#allocation2 + $0x110] sm:$0xff] %vm1066_vm2, %v1035_v39  ;;  %1102 = vst.msk [vmem:[#allocation2 + $0x118] sm:$0xff] %vm1066_vm2, %v1035_v39 }
 0x16b   :  { %v1021_v40 = vpop.permute.xlu0 %1020 }
 0x16c   :  { %v1037_v41 = vpop.permute.xlu1 %1036  ;;  %1071 = vst.msk [vmem:[#allocation2 + $0x20] sm:$0xff] %vm1066_vm2, %v1021_v40  ;;  %1072 = vst.msk [vmem:[#allocation2 + $0x28] sm:$0xff] %vm1066_vm2, %v1021_v40 }
 0x16d   :  { %1073 = vst.msk [vmem:[#allocation2 + $0x30] sm:$0xff] %vm1066_vm2, %v1021_v40  ;;  %1074 = vst.msk [vmem:[#allocation2 + $0x38] sm:$0xff] %vm1066_vm2, %v1021_v40 }
 0x16e   :  { %1103 = vst.msk [vmem:[#allocation2 + $0x120] sm:$0xff] %vm1066_vm2, %v1037_v41  ;;  %1104 = vst.msk [vmem:[#allocation2 + $0x128] sm:$0xff] %vm1066_vm2, %v1037_v41 }
 0x16f   :  { %1105 = vst.msk [vmem:[#allocation2 + $0x130] sm:$0xff] %vm1066_vm2, %v1037_v41  ;;  %1106 = vst.msk [vmem:[#allocation2 + $0x138] sm:$0xff] %vm1066_vm2, %v1037_v41 }
 0x175   :  { %v1023_v42 = vpop.permute.xlu1 %1022 }
 0x176   :  { %1075 = vst.msk [vmem:[#allocation2 + $0x40] sm:$0xff] %vm1066_vm2, %v1023_v42  ;;  %1076 = vst.msk [vmem:[#allocation2 + $0x48] sm:$0xff] %vm1066_vm2, %v1023_v42  ;;  %v1039_v43 = vpop.permute.xlu0 %1038 }
 0x177   :  { %1077 = vst.msk [vmem:[#allocation2 + $0x50] sm:$0xff] %vm1066_vm2, %v1023_v42  ;;  %1078 = vst.msk [vmem:[#allocation2 + $0x58] sm:$0xff] %vm1066_vm2, %v1023_v42 }
 0x178   :  { %1107 = vst.msk [vmem:[#allocation2 + $0x140] sm:$0xff] %vm1066_vm2, %v1039_v43  ;;  %1108 = vst.msk [vmem:[#allocation2 + $0x148] sm:$0xff] %vm1066_vm2, %v1039_v43 }
 0x179   :  { %1109 = vst.msk [vmem:[#allocation2 + $0x150] sm:$0xff] %vm1066_vm2, %v1039_v43  ;;  %1110 = vst.msk [vmem:[#allocation2 + $0x158] sm:$0xff] %vm1066_vm2, %v1039_v43 }
 0x17f   :  { %v1025_v44 = vpop.permute.xlu1 %1024 }
 0x180   :  { %1079 = vst.msk [vmem:[#allocation2 + $0x60] sm:$0xff] %vm1066_vm2, %v1025_v44  ;;  %1080 = vst.msk [vmem:[#allocation2 + $0x68] sm:$0xff] %vm1066_vm2, %v1025_v44 }
 0x181   :  { %1081 = vst.msk [vmem:[#allocation2 + $0x70] sm:$0xff] %vm1066_vm2, %v1025_v44  ;;  %1082 = vst.msk [vmem:[#allocation2 + $0x78] sm:$0xff] %vm1066_vm2, %v1025_v44 }
 0x184   :  { %v1041_v46 = vpop.permute.xlu1 %1040 }
 0x185   :  { %1111 = vst.msk [vmem:[#allocation2 + $0x160] sm:$0xff] %vm1066_vm2, %v1041_v46  ;;  %1112 = vst.msk [vmem:[#allocation2 + $0x168] sm:$0xff] %vm1066_vm2, %v1041_v46 }
 0x186   :  { %1113 = vst.msk [vmem:[#allocation2 + $0x170] sm:$0xff] %vm1066_vm2, %v1041_v46  ;;  %1114 = vst.msk [vmem:[#allocation2 + $0x178] sm:$0xff] %vm1066_vm2, %v1041_v46 }
 0x18a   :  { %v1027_v48 = vpop.permute.xlu0 %1026 }
 0x18b   :  { %1083 = vst.msk [vmem:[#allocation2 + $0x80] sm:$0xff] %vm1066_vm2, %v1027_v48  ;;  %1084 = vst.msk [vmem:[#allocation2 + $0x88] sm:$0xff] %vm1066_vm2, %v1027_v48 }
 0x18c   :  { %1085 = vst.msk [vmem:[#allocation2 + $0x90] sm:$0xff] %vm1066_vm2, %v1027_v48  ;;  %1086 = vst.msk [vmem:[#allocation2 + $0x98] sm:$0xff] %vm1066_vm2, %v1027_v48 }
 0x18d   :  { %v1029_v49 = vpop.permute.xlu1 %1028 }
 0x18e   :  { %v1043_v51 = vpop.permute.xlu0 %1042  ;;  %1087 = vst.msk [vmem:[#allocation2 + $0xa0] sm:$0xff] %vm1066_vm2, %v1029_v49  ;;  %1088 = vst.msk [vmem:[#allocation2 + $0xa8] sm:$0xff] %vm1066_vm2, %v1029_v49 }
 0x18f   :  { %1089 = vst.msk [vmem:[#allocation2 + $0xb0] sm:$0xff] %vm1066_vm2, %v1029_v49  ;;  %1090 = vst.msk [vmem:[#allocation2 + $0xb8] sm:$0xff] %vm1066_vm2, %v1029_v49 }
 0x190   :  { %1115 = vst.msk [vmem:[#allocation2 + $0x180] sm:$0xff] %vm1066_vm2, %v1043_v51  ;;  %1116 = vst.msk [vmem:[#allocation2 + $0x188] sm:$0xff] %vm1066_vm2, %v1043_v51 }
 0x191   :  { %1117 = vst.msk [vmem:[#allocation2 + $0x190] sm:$0xff] %vm1066_vm2, %v1043_v51  ;;  %1118 = vst.msk [vmem:[#allocation2 + $0x198] sm:$0xff] %vm1066_vm2, %v1043_v51  ;;  %v1045_v52 = vpop.permute.xlu1 %1044 }
 0x192   :  { %1119 = vst.msk [vmem:[#allocation2 + $0x1a0] sm:$0xff] %vm1066_vm2, %v1045_v52  ;;  %1120 = vst.msk [vmem:[#allocation2 + $0x1a8] sm:$0xff] %vm1066_vm2, %v1045_v52  ;;  %v1031_v53 = vpop.permute.xlu0 %1030 }
 0x193   :  { %1121 = vst.msk [vmem:[#allocation2 + $0x1b0] sm:$0xff] %vm1066_vm2, %v1045_v52  ;;  %1122 = vst.msk [vmem:[#allocation2 + $0x1b8] sm:$0xff] %vm1066_vm2, %v1045_v52 }
 0x194   :  { %1091 = vst.msk [vmem:[#allocation2 + $0xc0] sm:$0xff] %vm1066_vm2, %v1031_v53  ;;  %1092 = vst.msk [vmem:[#allocation2 + $0xc8] sm:$0xff] %vm1066_vm2, %v1031_v53 }
 0x195   :  { %1093 = vst.msk [vmem:[#allocation2 + $0xd0] sm:$0xff] %vm1066_vm2, %v1031_v53  ;;  %1094 = vst.msk [vmem:[#allocation2 + $0xd8] sm:$0xff] %vm1066_vm2, %v1031_v53 }
 0x196   :  { %v1047_v20 = vpop.permute.xlu0 %1046 }
 0x197   :  { %1123 = vst.msk [vmem:[#allocation2 + $0x1c0] sm:$0xff] %vm1066_vm2, %v1047_v20  ;;  %1124 = vst.msk [vmem:[#allocation2 + $0x1c8] sm:$0xff] %vm1066_vm2, %v1047_v20  ;;  %v1033_v55 = vpop.permute.xlu1 %1032 }
 0x198   :  { %1125 = vst.msk [vmem:[#allocation2 + $0x1d0] sm:$0xff] %vm1066_vm2, %v1047_v20  ;;  %1126 = vst.msk [vmem:[#allocation2 + $0x1d8] sm:$0xff] %vm1066_vm2, %v1047_v20 }
 0x199   :  { %1095 = vst.msk [vmem:[#allocation2 + $0xe0] sm:$0xff] %vm1066_vm2, %v1033_v55  ;;  %1096 = vst.msk [vmem:[#allocation2 + $0xe8] sm:$0xff] %vm1066_vm2, %v1033_v55 }
 0x19a   :  { %1097 = vst.msk [vmem:[#allocation2 + $0xf0] sm:$0xff] %vm1066_vm2, %v1033_v55  ;;  %1098 = vst.msk [vmem:[#allocation2 + $0xf8] sm:$0xff] %vm1066_vm2, %v1033_v55 }
 0x19b   :  { %v1049_v56 = vpop.permute.xlu1 %1048 }
 0x19c   :  { %1127 = vst.msk [vmem:[#allocation2 + $0x1e0] sm:$0xff] %vm1066_vm2, %v1049_v56  ;;  %1128 = vst.msk [vmem:[#allocation2 + $0x1e8] sm:$0xff] %vm1066_vm2, %v1049_v56 }
 0x19d   :  { %1129 = vst.msk [vmem:[#allocation2 + $0x1f0] sm:$0xff] %vm1066_vm2, %v1049_v56  ;;  %1130 = vst.msk [vmem:[#allocation2 + $0x1f8] sm:$0xff] %vm1066_vm2, %v1049_v56 }
 0x19e   :  { %1392 = shalt.err (!%p1389_p4)
}
 0x19f   :  { %s1405_s6 = smov 128   ;;  %s1406_s7 = smov 8  }
 0x1a0   :  { %1142 = dma.vmem_to_hbm [thread:$0]  %s1137_s4, 8192, %s2031_s3, [#allocation3], %s1405_s6, %s1405_s6, %s1406_s7  }
 0x1a1   :  { %1401 = dma.done.wait [#allocation3], 8192  }
 0x1a2   :  { %1402 = vsyncadd [#allocation3], 4294959104 }
 0x1a3   :  { %1146 = vsyncpa [#allocation3], 1 }

</bundles_post_ra>
